<compile_context>
chip_gen: v7x
topology: tpu7x:2x2x1
jax: 0.10.0
libtpu: 0.0.40
codegen_flags: <defaults>
</compile_context>

<pallas_src>
import jax
import jax.numpy as jnp
from jax.experimental import pallas as pl
from jax.experimental.pallas import tpu as pltpu

_EPS = 1e-10
_MAX_BLOCK_B = 512        # rows per batch tile
_MAX_BLOCK_C = 32768      # lanes per channel tile (bounds unroll & keeps DMA rows long)


def _round_up(x, m):
    return (x + m - 1) // m * m


def _sublane(dtype):
    return {4: 8, 2: 16, 1: 32}.get(jnp.dtype(dtype).itemsize, 8)


def _vmem_capacity_bytes():
    try:
        return int(pltpu.get_tpu_info().vmem_capacity_bytes)
    except Exception:
        return 64 * 1024 * 1024   # conservative fallback (v7x-sized)


def _js_term(p, q):
    """p*log((p+eps)/(m+eps)) + q*log((q+eps)/(m+eps)), divide-free (3 logs)."""
    p = p.astype(jnp.float32)
    q = q.astype(jnp.float32)
    m = 0.5 * (p + q)
    log_m = jnp.log(m + _EPS)
    return p * (jnp.log(p + _EPS) - log_m) + q * (jnp.log(q + _EPS) - log_m)


def _js_kernel_single(p_ref, q_ref, o_ref):
    # Whole row resident in one tile: single pass, no accumulator needed.
    term = _js_term(p_ref[...], q_ref[...])
    o_ref[...] = (0.5 * jnp.sum(term, axis=1, keepdims=True)).astype(o_ref.dtype)


def _make_tiled_kernel(c_total, block_c):
    groups = block_c // 128
    mask_tail = (c_total % block_c) != 0

    def kernel(p_ref, q_ref, o_ref, acc_ref):
        c = pl.program_id(1)

        @pl.when(c == 0)
        def _init():
            acc_ref[...] = jnp.zeros_like(acc_ref)

        term = _js_term(p_ref[...], q_ref[...])

        if mask_tail:
            # Zero out-of-range columns of the C-tail tile (garbage reads).
            col = jax.lax.broadcasted_iota(jnp.int32, (1, block_c), 1)
            term = jnp.where(col + c * block_c < c_total, term, 0.0)

        # Lane-dense partial sums: fold the tile down to 128 lanes with a
        # pairwise tree of aligned vreg adds (no per-step cross-lane reduce).
        parts = [term[:, g * 128:(g + 1) * 128] for g in range(groups)]
        while len(parts) > 1:
            nxt = [a + b for a, b in zip(parts[0::2], parts[1::2])]
            if len(parts) % 2:
                nxt.append(parts[-1])
            parts = nxt
        acc_ref[...] += parts[0]

        @pl.when(c == pl.num_programs(1) - 1)
        def _finalize():
            o_ref[...] = (0.5 * jnp.sum(acc_ref[...], axis=1, keepdims=True)
                          ).astype(o_ref.dtype)

    return kernel


def jensen_shannon(p, q, *, block_c_cap=None):
    """JS divergence between rows of p and q. p, q: (B, C) -> (B,)."""
    assert p.shape == q.shape and p.ndim == 2, "expected matching (B, C) inputs"
    B, C = p.shape
    itemsize = jnp.dtype(p.dtype).itemsize
    sub = _sublane(p.dtype)

    # ---- batch tile: >= 2 blocks when possible (v7x has 2 TensorCores) ------
    if B <= sub:
        block_b = B
    else:
        block_b = min(_MAX_BLOCK_B, _round_up(pl.cdiv(B, 2), sub))
    nb = pl.cdiv(B, block_b)

    # ---- channel tile sized against a generation-aware VMEM budget ----------
    capacity = _vmem_capacity_bytes()
    budget = capacity // 2
    # Per column: 2 inputs x 2 pipeline buffers + ~4 tile-sized f32 temporaries
    # (bf16 upcasts / m / log_m / term) -- deliberately generous headroom.
    per_col = block_b * (4 * itemsize + 4 * 4)
    max_cols = max(128, budget // per_col)
    if block_c_cap is not None:
        max_cols = min(max_cols, block_c_cap)

    c128 = _round_up(C, 128)
    use_single = (C <= 128) or (
        c128 <= max_cols and (block_c_cap is None or C <= block_c_cap))
    if use_single:
        block_c = C                                   # whole row, one C step
        nc = 1
    else:
        block_c = max(128, min(_MAX_BLOCK_C, (max_cols // 128) * 128))
        nc = pl.cdiv(C, block_c)

    # ---- explicit VMEM limit: tiles + intermediates + accum/out + slack -----
    tile_bytes = per_col * block_c
    aux_bytes = 4 * block_b * 128 * 4 + (2 << 20)
    cap = min(capacity - (16 << 20), 100 << 20)
    vmem_limit = int(min(max(tile_bytes + aux_bytes + (4 << 20), 32 << 20), cap))

    out_shape = jax.ShapeDtypeStruct((B, 1), jnp.float32)

    if nc == 1:
        out = pl.pallas_call(
            _js_kernel_single,
            out_shape=out_shape,
            grid_spec=pltpu.PrefetchScalarGridSpec(
                num_scalar_prefetch=0,
                grid=(nb,),
                in_specs=[
                    pl.BlockSpec((block_b, block_c), lambda i: (i, 0)),
                    pl.BlockSpec((block_b, block_c), lambda i: (i, 0)),
                ],
                out_specs=pl.BlockSpec((block_b, 1), lambda i: (i, 0)),
            ),
            compiler_params=pltpu.CompilerParams(
                dimension_semantics=("parallel",),
                vmem_limit_bytes=vmem_limit,
            ),
        )(p, q)
    else:
        out = pl.pallas_call(
            _make_tiled_kernel(C, block_c),
            out_shape=out_shape,
            grid_spec=pltpu.PrefetchScalarGridSpec(
                num_scalar_prefetch=0,
                grid=(nb, nc),
                in_specs=[
                    pl.BlockSpec((block_b, block_c), lambda i, c: (i, c)),
                    pl.BlockSpec((block_b, block_c), lambda i, c: (i, c)),
                ],
                out_specs=pl.BlockSpec((block_b, 1), lambda i, c: (i, 0)),
                scratch_shapes=[pltpu.VMEM((block_b, 128), jnp.float32)],
            ),
            compiler_params=pltpu.CompilerParams(
                dimension_semantics=("parallel", "arbitrary"),
                vmem_limit_bytes=vmem_limit,
            ),
        )(p, q)

    return out[:, 0].astype(p.dtype)


def _reference(p, q):
    p = p.astype(jnp.float32)
    q = q.astype(jnp.float32)
    m = (p + q) / 2.0
    kl = lambda a, b: jnp.sum(a * jnp.log((a + _EPS) / (b + _EPS)), axis=1)
    return 0.5 * kl(p, m) + 0.5 * kl(q, m)


if __name__ == "__main__":
    key = jax.random.PRNGKey(0)
    k1, k2, k3, k4, k5, k6 = jax.random.split(key, 6)

    # Case 1: small aligned shape (single batch block, single C block).
    B, C = 8, 128
    p = jax.nn.softmax(jax.random.normal(k1, (B, C), dtype=jnp.float32), axis=1)
    q = jax.nn.softmax(jax.random.normal(k2, (B, C), dtype=jnp.float32), axis=1)
    out = jensen_shannon(p, q)
    jax.block_until_ready(out)
    ref = _reference(p, q)
    assert out.shape == (B,)
    assert jnp.allclose(out, ref, atol=1e-5, rtol=1e-5), (out, ref)

    # Case 2: unaligned B and C (partial batch block, no padding copies).
    B2, C2 = 20, 200
    p2 = jax.nn.softmax(jax.random.normal(k3, (B2, C2), dtype=jnp.float32), axis=1)
    q2 = jax.nn.softmax(jax.random.normal(k4, (B2, C2), dtype=jnp.float32), axis=1)
    out2 = jensen_shannon(p2, q2)
    jax.block_until_ready(out2)
    ref2 = _reference(p2, q2)
    assert out2.shape == (B2,)
    assert jnp.allclose(out2, ref2, atol=1e-5, rtol=1e-5), (out2, ref2)

    # Case 3: force the C-tiled accumulator path (exercises lane tail masking).
    out3 = jensen_shannon(p2, q2, block_c_cap=128)
    jax.block_until_ready(out3)
    assert jnp.allclose(out3, ref2, atol=1e-5, rtol=1e-5), (out3, ref2)

    # Case 4: bf16 inputs (16-row sublane tiles; math still done in f32).
    B4, C4 = 20, 256
    p4 = jax.nn.softmax(jax.random.normal(k5, (B4, C4), dtype=jnp.float32),
                        axis=1).astype(jnp.bfloat16)
    q4 = jax.nn.softmax(jax.random.normal(k6, (B4, C4), dtype=jnp.float32),
                        axis=1).astype(jnp.bfloat16)
    out4 = jensen_shannon(p4, q4)
    jax.block_until_ready(out4)
    ref4 = _reference(p4, q4)
    assert out4.shape == (B4,)
    assert jnp.allclose(out4.astype(jnp.float32), ref4, atol=5e-3, rtol=2e-2), (out4, ref4)

    print("KERNEL_OK")
</pallas_src>

<mosaic_0001>
module attributes {stable_mosaic.version = 11 : i64} {
  func.func @_js_kernel_single(%arg0: i32, %arg1: memref<8x128xf32, #tpu.memory_space<vmem>>, %arg2: memref<8x128xf32, #tpu.memory_space<vmem>>, %arg3: memref<8x1xf32, #tpu.memory_space<vmem>>) attributes {dimension_semantics = [#tpu.dimension_semantics<parallel>], iteration_bounds = array<i64: 1>, scalar_prefetch = 0 : i64, scratch_operands = 0 : i64, tpu.core_type = #tpu.core_type<tc>, window_params = [{transform_indices = @transform_0, window_bounds = array<i64: 8, 128>}, {transform_indices = @transform_1, window_bounds = array<i64: 8, 128>}, {transform_indices = @transform_2, window_bounds = array<i64: 8, 1>}]} {
    %c0 = arith.constant 0 : index
    %c0_0 = arith.constant 0 : index
    %0 = vector.load %arg1[%c0, %c0_0] : memref<8x128xf32, #tpu.memory_space<vmem>>, vector<8x128xf32>
    %c0_1 = arith.constant 0 : index
    %c0_2 = arith.constant 0 : index
    %1 = vector.load %arg2[%c0_1, %c0_2] : memref<8x128xf32, #tpu.memory_space<vmem>>, vector<8x128xf32>
    %2 = arith.addf %0, %1 : vector<8x128xf32>
    %cst = arith.constant 5.000000e-01 : f32
    %3 = vector.broadcast %cst : f32 to vector<8x128xf32>
    %4 = arith.mulf %3, %2 : vector<8x128xf32>
    %cst_3 = arith.constant 1.000000e-10 : f32
    %5 = vector.broadcast %cst_3 : f32 to vector<8x128xf32>
    %6 = arith.addf %4, %5 : vector<8x128xf32>
    %7 = math.log %6 : vector<8x128xf32>
    %cst_4 = arith.constant 1.000000e-10 : f32
    %8 = vector.broadcast %cst_4 : f32 to vector<8x128xf32>
    %9 = arith.addf %0, %8 : vector<8x128xf32>
    %10 = math.log %9 : vector<8x128xf32>
    %11 = arith.subf %10, %7 : vector<8x128xf32>
    %12 = arith.mulf %0, %11 : vector<8x128xf32>
    %cst_5 = arith.constant 1.000000e-10 : f32
    %13 = vector.broadcast %cst_5 : f32 to vector<8x128xf32>
    %14 = arith.addf %1, %13 : vector<8x128xf32>
    %15 = math.log %14 : vector<8x128xf32>
    %16 = arith.subf %15, %7 : vector<8x128xf32>
    %17 = arith.mulf %1, %16 : vector<8x128xf32>
    %18 = arith.addf %12, %17 : vector<8x128xf32>
    %cst_6 = arith.constant dense<0.000000e+00> : vector<8xf32>
    %19 = vector.multi_reduction <add>, %18, %cst_6 [1] : vector<8x128xf32> to vector<8xf32>
    %20 = vector.shape_cast %19 : vector<8xf32> to vector<8x1xf32>
    %cst_7 = arith.constant 5.000000e-01 : f32
    %21 = vector.broadcast %cst_7 : f32 to vector<8x1xf32>
    %22 = arith.mulf %21, %20 : vector<8x1xf32>
    %c0_8 = arith.constant 0 : index
    %c0_9 = arith.constant 0 : index
    %23 = vector.load %arg3[%c0_8, %c0_9] : memref<8x1xf32, #tpu.memory_space<vmem>>, vector<8x1xf32>
    tpu.vector_store %arg3[%c0_8, %c0_9], %22 {strides = array<i32>} : memref<8x1xf32, #tpu.memory_space<vmem>>, vector<8x1xf32>,
    return
  }
  func.func @transform_0(%arg0: i32) -> (i32, i32) {
    %c0_i32 = arith.constant 0 : i32
    %c0_i32_0 = arith.constant 0 : i32
    return %arg0, %c0_i32 : i32, i32
  }
  func.func @transform_1(%arg0: i32) -> (i32, i32) {
    %c0_i32 = arith.constant 0 : i32
    %c0_i32_0 = arith.constant 0 : i32
    return %arg0, %c0_i32 : i32, i32
  }
  func.func @transform_2(%arg0: i32) -> (i32, i32) {
    %c0_i32 = arith.constant 0 : i32
    %c0_i32_0 = arith.constant 0 : i32
    return %arg0, %c0_i32 : i32, i32
  }
}

</mosaic_0001>

<bundles_post_ra>
// kernel: tpu_custom_call.1
= control target key start
LH: loop header
LB: loop body
LE: loop exit
PB: predicated region body
PF: predicated region fallthrough
CT: control target
= control target key end

     0   :  { %7 = vsyncpa [#allocation3], 0  ;;  %s164_s0 = inlined_call_operand.hbm [shape: f32[8,128], index: 0, kind: input, shape index: {}]   ;;  %s165_s1 = inlined_call_operand.hbm [shape: f32[8,128], index: 1, kind: input, shape index: {}]   ;;  %s166_s2 = inlined_call_operand.vmem [shape: f32[8,1], index: 2, kind: output, shape index: {}]  }
   0x1   :  { %8 = vsyncpa [#allocation5], 0  ;;  %s120_s9 = smov [#allocation2]   ;;  %s121_s11 = smov [#allocation4]  }
   0x2   :  { %s15_s10 = sshll.u32 %s120_s9, 4  ;;  %s25_s12 = sshll.u32 %s121_s11, 4  ;;  %s16_s10 = int_to_ptr.vmem [resolvable:$true] %s15_s10  ;;  %s26_s12 = int_to_ptr.vmem [resolvable:$true] %s25_s12 }
   0x3   :  { %s72_s15 = scalar_lea.hbm %s164_s0, 128 }
   0x4   :  { %p73_p0 = scmp.ne.s32.totalorder %s164_s0, %s72_s15  ;;  %p76_p1 = scmp.lt.u32.totalorder %s72_s15, %s164_s0 }
   0x6   :  { %p78_p2 = pnand %p76_p1, %p73_p0 }
   0x8   :  { %81 = shalt.err (!%p78_p2)
}
   0x9   :  { %s82_s20 = scalar_lea.vmem %s16_s10, 128  ;;  %p87_p4 = scmp.lt.s32.totalorder %s16_s10, %s16_s10 }
   0xa   :  { %p83_p3 = scmp.ne.s32.totalorder %s16_s10, %s82_s20  ;;  %p88_p5 = scmp.lt.s32.totalorder %s82_s20, %s82_s20 }
   0xc   :  { %p89_p6 = por %p88_p5, %p87_p4 }
   0xe   :  { %p90_p7 = pnand %p89_p6, %p83_p3 }
  0x10   :  { %93 = shalt.err (!%p90_p7)
}
  0x11   :  { %18 = dma.hbm_to_vmem [thread:$0]  %s164_s0, 128, %s16_s10, [#allocation3]  }
  0x12   :  { %s94_s25 = scalar_lea.hbm %s165_s1, 128 }
  0x13   :  { %p95_p8 = scmp.ne.s32.totalorder %s165_s1, %s94_s25  ;;  %p98_p9 = scmp.lt.u32.totalorder %s94_s25, %s165_s1 }
  0x15   :  { %p100_p10 = pnand %p98_p9, %p95_p8 }
  0x17   :  { %103 = shalt.err (!%p100_p10)
}
  0x18   :  { %s104_s30 = scalar_lea.vmem %s26_s12, 128  ;;  %p109_p12 = scmp.lt.s32.totalorder %s26_s12, %s26_s12 }
  0x19   :  { %p105_p11 = scmp.ne.s32.totalorder %s26_s12, %s104_s30  ;;  %p110_p13 = scmp.lt.s32.totalorder %s104_s30, %s104_s30 }
  0x1b   :  { %p111_p0 = por %p110_p13, %p109_p12 }
  0x1d   :  { %p112_p1 = pnand %p111_p0, %p105_p11 }
  0x1f   :  { %115 = shalt.err (!%p112_p1)
}
  0x20   :  { %28 = dma.hbm_to_vmem [thread:$0]  %s165_s1, 128, %s26_s12, [#allocation5]  }
  0x21   :  { %116 = dma.done.wait [#allocation3], 128  }
  0x22   :  { %117 = vsyncadd [#allocation3], 4294967168 }
  0x23   :  { %118 = dma.done.wait [#allocation5], 128  }
  0x24   :  { %119 = vsyncadd [#allocation5], 4294967168  ;;  %v35_v0 = vld [vmem:[#allocation2] sm:$0xff]  ;;  %v36_v1 = vld [vmem:[#allocation4] sm:$0xff]  ;;  %vm56_vm0 = vcmask 7168  }
  0x25   :  { %v37_v2 = vadd.f32 %v36_v1, %v35_v0  ;;  %v42_v3 = vadd.f32 1e-10, %v35_v0  ;;  %v47_v4 = vadd.f32 1e-10, %v36_v1 }
  0x27   :  { %v38_v5 = vmul.f32 0.5, %v37_v2  ;;  %66 = vlog2.f32 %v42_v3 }
  0x28   :  { %68 = vlog2.f32 %v47_v4 }
  0x29   :  { %v39_v6 = vadd.f32 1e-10, %v38_v5 }
  0x2b   :  { %70 = vlog2.f32 %v39_v6 }
  0x31   :  { %v67_v7 = vpop.eup %66 }
  0x32   :  { %v69_v8 = vpop.eup %68  ;;  %v44_v9 = vmul.f32 0.6931472, %v67_v7 }
  0x33   :  { %v49_v10 = vmul.f32 0.6931472, %v69_v8 }
  0x35   :  { %v71_v11 = vpop.eup %70 }
  0x36   :  { %v41_v12 = vmul.f32 0.6931472, %v71_v11 }
  0x38   :  { %v45_v13 = vsub.f32 %v44_v9, %v41_v12  ;;  %v50_v14 = vsub.f32 %v49_v10, %v41_v12 }
  0x3a   :  { %v46_v15 = vmul.f32 %v45_v13, %v35_v0  ;;  %v51_v16 = vmul.f32 %v50_v14, %v36_v1 }
  0x3c   :  { %v52_v17 = vadd.f32 %v51_v16, %v46_v15 }
  0x3e   :  { %53 = vadd.xlane.f32.xlu0 %v52_v17 }
  0xcb   :  { %v54_v18 = vpop.xlane.xlu0 %53 }
  0xcc   :  { %v55_v19 = vmul.f32 0.5, %v54_v18 }
  0xce   :  { %57 = vst.msk [vmem:[%s166_s2] sm:$0xff] %vm56_vm0, %v55_v19 }
  0xcf   :  { %62 = vsyncpa [#allocation3], 1 }
  0xd0   :  { %63 = vsyncpa [#allocation5], 1 }

</bundles_post_ra>
